<compile_context>
chip_gen: v7x
topology: tpu7x:2x2x1
jax: 0.10.0
libtpu: 0.0.40
codegen_flags: <defaults>
</compile_context>

<pallas_src>
import functools

import jax
import jax.numpy as jnp
from jax.experimental import pallas as pl
from jax.experimental.pallas import tpu as pltpu


def _tour_len_kernel(xy_ref, out_ref, acc, fx, fy, px, py, *, seq_len):
    """One (batch-tile, seq-tile) step of the closed-tour length reduction.

    xy_ref:  (2, TS, TB) -- [x-plane, y-plane] of the tour in visiting order,
             seq on sublanes, batch on lanes (any float dtype; upcast here).
    out_ref: (1, TB) f32 -- per-batch-element tour length (lane-dense),
             written only on the last seq tile.
    acc/fx/fy/px/py: (1, TB) f32 VMEM scratch -- partial sum, first point of
             the tour, last valid point seen so far (carry across seq tiles).
    """
    j = pl.program_id(1)
    last_j = pl.num_programs(1) - 1

    xs = xy_ref[0].astype(jnp.float32)          # (TS, TB)
    ys = xy_ref[1].astype(jnp.float32)
    ts, tb = xs.shape

    row = jax.lax.broadcasted_iota(jnp.int32, (ts, tb), 0)   # local seq index
    g_row = row + j * ts                                     # global seq index
    valid = g_row < seq_len                                  # partial-tile mask

    # Predecessor within this tile (row k pairs with row k-1).  Row 0's pairing
    # is handled separately (cross-tile carry / closed-tour wrap), so whatever
    # the roll wraps into row 0 is masked out below.
    if ts % 8 == 0:
        xp = pltpu.roll(xs, shift=1, axis=0)    # XLU rotate: free next to loads
        yp = pltpu.roll(ys, shift=1, axis=0)
    else:
        xp = jnp.roll(xs, shift=1, axis=0)
        yp = jnp.roll(ys, shift=1, axis=0)
    dx = xs - xp                                # abs() in the torch code is a no-op here
    dy = ys - yp
    seg = jnp.sqrt(dx * dx + dy * dy)           # (TS, TB) segment lengths (EUP)
    seg = jnp.where((row >= 1) & valid, seg, 0.0)
    tile_sum = jnp.sum(seg, axis=0, keepdims=True)           # (1, TB), XLU reduce

    @pl.when(j == 0)
    def _():
        acc[...] = jnp.zeros_like(acc)
        fx[...] = xs[0:1, :]                    # first point of the tour
        fy[...] = ys[0:1, :]

    @pl.when(j > 0)
    def _():
        # Boundary segment: first point of this tile vs. carried previous point.
        bdx = xs[0:1, :] - px[...]
        bdy = ys[0:1, :] - py[...]
        acc[...] += jnp.sqrt(bdx * bdx + bdy * bdy)

    acc[...] += tile_sum

    # Carry the last *valid* point of this tile (handles the padded final tile).
    n_valid = jnp.minimum(seq_len - j * ts, ts)
    is_last_valid = row == (n_valid - 1)
    px[...] = jnp.sum(jnp.where(is_last_valid, xs, 0.0), axis=0, keepdims=True)
    py[...] = jnp.sum(jnp.where(is_last_valid, ys, 0.0), axis=0, keepdims=True)

    @pl.when(j == last_j)
    def _():
        # Closed-tour wrap segment: last point -> first point.
        wdx = fx[...] - px[...]
        wdy = fy[...] - py[...]
        out_ref[...] = (acc[...] + jnp.sqrt(wdx * wdx + wdy * wdy)).astype(out_ref.dtype)


def _round_up(x, m):
    return ((x + m - 1) // m) * m


def _pick_tiles(batch, seq, dtype_bytes, block_bytes=4 * 1024 * 1024,
                min_batch_steps=4):
    """(seq_tile, batch_tile) for a ~block_bytes (2, TS, TB) input block.

    * seq tile: full S when it fits a 128-lane block, else a multiple of 8
      (keeps per-step VMEM bounded for long tours).
    * batch tile: multiple of 128 (or the full batch), sized for ~block_bytes
      but capped so the batch grid has >= min_batch_steps blocks whenever
      possible -> both v7x TensorCores busy + pipeline overlap.
    Double buffering => ~2x resident; 4 MiB blocks stay comfortably under the
    explicit 32 MiB scoped VMEM limit on all generations (v7x: 64 MiB physical).
    """
    ts_cap = max(8, (block_bytes // (2 * 128 * dtype_bytes)) // 8 * 8)
    ts = seq if seq <= ts_cap else ts_cap

    tb = max(128, (block_bytes // (2 * ts * dtype_bytes)) // 128 * 128)
    tb = min(tb, max(128, _round_up(-(-batch // min_batch_steps), 128)))
    if batch <= tb:
        tb = batch          # block dim == full array dim is always legal
    return ts, tb


def tour_length(tour_planes, batch_tile=None, seq_tile=None):
    """Pallas equivalent of Solver.reward.

    tour_planes: (2, S, B) float -- x/y coordinate planes of the tour in
                 visiting order, batch mapped to the lane (last) axis.
                 bf16 input is accepted (halves HBM traffic); math is in f32.
    returns:     (B,) float32 closed-tour length.
    """
    two, S, B = tour_planes.shape
    assert two == 2
    dtype_bytes = jnp.dtype(tour_planes.dtype).itemsize

    ts, tb = _pick_tiles(B, S, dtype_bytes)
    if seq_tile is not None:
        ts = seq_tile
    if batch_tile is not None:
        tb = batch_tile
    grid = (pl.cdiv(B, tb), pl.cdiv(S, ts))    # batch parallel, seq reduction-last

    kernel = functools.partial(_tour_len_kernel, seq_len=S)
    out = pl.pallas_call(
        kernel,
        out_shape=jax.ShapeDtypeStruct((1, B), jnp.float32),
        grid_spec=pltpu.PrefetchScalarGridSpec(
            num_scalar_prefetch=0,
            grid=grid,
            in_specs=[pl.BlockSpec((2, ts, tb), lambda i, j: (0, j, i))],
            out_specs=pl.BlockSpec((1, tb), lambda i, j: (0, i)),
            scratch_shapes=[pltpu.VMEM((1, tb), jnp.float32)] * 5,
        ),
        compiler_params=pltpu.CompilerParams(
            dimension_semantics=("parallel", "arbitrary"),  # v7x: shard batch over 2 TCs
            vmem_limit_bytes=32 * 1024 * 1024,              # explicit (v5e default is 16 MiB)
            allow_input_fusion=[True],   # let XLA fuse the transpose+gather producer
        ),
    )(tour_planes)
    return out[0]


def _dummy_actor(inputs):
    # TODO(synk): Solver.__init__ defines no self.actor; substitute a
    # deterministic identity permutation and uniform probabilities.
    B, S, _ = inputs.shape
    actions = jnp.tile(jnp.arange(S, dtype=jnp.int32)[None, :], (B, 1))   # (B, S)
    probs = jnp.full((B, S), 1.0 / S, dtype=jnp.float32)                  # (B, S)
    return probs, actions


def solver_forward(inputs, batch_tile=None, seq_tile=None):
    """Mirrors Solver.forward.

    inputs: [batch_size, seq_len, 2] float city coordinates
            (the gather along dim 1 with a [B, S, 2] index implies this layout).
    returns: (R [B], probs [B, S], actions [B, S])
    """
    probs, actions = _dummy_actor(inputs)
    # torch: inputs.gather(1, actions.unsqueeze(2).repeat(1, 1, 2))
    # Done on the coordinate-major, batch-on-lanes layout so the kernel input is
    # a single contiguous (2, S, B) slab; with allow_input_fusion the producer
    # can fuse into the pallas_call operand instead of materialising in HBM.
    # TODO(synk): fusing this data-dependent gather into the kernel itself would
    # need per-lane dynamic-gather support; it is left to XLA here.
    inputs_t = jnp.transpose(inputs, (2, 1, 0))                       # (2, S, B)
    idx_t = jnp.broadcast_to(actions.T[None, :, :], inputs_t.shape)   # (2, S, B)
    tour_t = jnp.take_along_axis(inputs_t, idx_t, axis=1)             # (2, S, B)
    R = tour_length(tour_t, batch_tile=batch_tile, seq_tile=seq_tile) # (B,)
    return R, probs, actions


def _reference(inputs, actions):
    idx = jnp.broadcast_to(actions[:, :, None], inputs.shape)
    tour = jnp.take_along_axis(inputs, idx, axis=1)
    nxt = jnp.roll(tour, shift=-1, axis=1)
    return jnp.sum(jnp.sqrt(jnp.sum((tour - nxt) ** 2, axis=-1)), axis=1)


if __name__ == "__main__":
    key = jax.random.PRNGKey(0)
    k1, k2 = jax.random.split(key)

    # Config 1: default tiling -> 2 batch blocks (both v7x TCs), single seq tile.
    B, S = 256, 16
    inputs = jax.random.uniform(k1, (B, S, 2), dtype=jnp.float32)
    fwd = jax.jit(solver_forward)
    R, probs, actions = fwd(inputs)
    jax.block_until_ready(R)
    ref = _reference(inputs, actions)
    assert R.shape == (B,) and probs.shape == (B, S) and actions.shape == (B, S)
    assert jnp.allclose(R, ref, rtol=1e-5, atol=1e-5), (R[:4], ref[:4])

    # Config 2: forced seq tiling (carry + wrap + partial seq/batch tiles).
    B2, S2 = 160, 20
    inputs2 = jax.random.uniform(k2, (B2, S2, 2), dtype=jnp.float32)
    fwd2 = jax.jit(functools.partial(solver_forward, batch_tile=128, seq_tile=8))
    R2, probs2, actions2 = fwd2(inputs2)
    jax.block_until_ready(R2)
    ref2 = _reference(inputs2, actions2)
    assert jnp.allclose(R2, ref2, rtol=1e-5, atol=1e-5), (R2[:4], ref2[:4])

    print("KERNEL_OK")
</pallas_src>

<mosaic_0001>
module attributes {stable_mosaic.version = 11 : i64} {
  func.func private @main(%arg0: i32) attributes {dimension_semantics = [#tpu.dimension_semantics<core_parallel>], iteration_bounds = array<i64: 2>, tpu.core_type = #tpu.core_type<sc_scalar_subcore>, window_params = []} {
    return
  }
}

module attributes {stable_mosaic.version = 11 : i64} {
  func.func private @main(%arg0: i32) attributes {dimension_semantics = [#tpu.dimension_semantics<core_parallel>], iteration_bounds = array<i64: 2>, tpu.core_type = #tpu.core_type<sc_scalar_subcore>, window_params = []} {
    return
  }
}

module attributes {stable_mosaic.version = 11 : i64} {
  func.func @_tour_len_kernel(%arg0: i32, %arg1: i32, %arg2: memref<2x16x128xf32, #tpu.memory_space<vmem>>, %arg3: memref<1x128xf32, #tpu.memory_space<vmem>>, %arg4: memref<1x128xf32, #tpu.memory_space<vmem>>, %arg5: memref<1x128xf32, #tpu.memory_space<vmem>>, %arg6: memref<1x128xf32, #tpu.memory_space<vmem>>, %arg7: memref<1x128xf32, #tpu.memory_space<vmem>>, %arg8: memref<1x128xf32, #tpu.memory_space<vmem>>) attributes {dimension_semantics = [#tpu.dimension_semantics<parallel>, #tpu.dimension_semantics<arbitrary>], iteration_bounds = array<i64: 2, 1>, scalar_prefetch = 0 : i64, scratch_operands = 5 : i64, tpu.core_type = #tpu.core_type<tc>, window_params = [{transform_indices = @transform_0, window_bounds = array<i64: 2, 16, 128>}, {transform_indices = @transform_1, window_bounds = array<i64: 1, 128>}]} {
    %c0 = arith.constant 0 : index
    %c0_0 = arith.constant 0 : index
    %c0_1 = arith.constant 0 : index
    %0 = vector.load %arg2[%c0, %c0_0, %c0_1] : memref<2x16x128xf32, #tpu.memory_space<vmem>>, vector<1x16x128xf32>
    %1 = vector.shape_cast %0 : vector<1x16x128xf32> to vector<16x128xf32>
    %c1 = arith.constant 1 : index
    %c0_2 = arith.constant 0 : index
    %c0_3 = arith.constant 0 : index
    %2 = vector.load %arg2[%c1, %c0_2, %c0_3] : memref<2x16x128xf32, #tpu.memory_space<vmem>>, vector<1x16x128xf32>
    %3 = vector.shape_cast %2 : vector<1x16x128xf32> to vector<16x128xf32>
    %4 = tpu.iota {dimensions = array<i32: 0>} : vector<16x128xi32>
    %c16_i32 = arith.constant 16 : i32
    %5 = arith.muli %arg1, %c16_i32 : i32
    %6 = vector.broadcast %5 : i32 to vector<16x128xi32>
    %7 = arith.addi %4, %6 : vector<16x128xi32>
    %c16_i32_4 = arith.constant 16 : i32
    %8 = vector.broadcast %c16_i32_4 : i32 to vector<16x128xi32>
    %9 = arith.cmpi slt, %7, %8 : vector<16x128xi32>
    %c1_i32 = arith.constant 1 : i32
    %10 = tpu.dynamic_rotate %1 by %c1_i32 dim 0 : vector<16x128xf32>, i32 -> vector<16x128xf32>
    %c1_i32_5 = arith.constant 1 : i32
    %11 = tpu.dynamic_rotate %3 by %c1_i32_5 dim 0 : vector<16x128xf32>, i32 -> vector<16x128xf32>
    %12 = arith.subf %1, %10 : vector<16x128xf32>
    %13 = arith.subf %3, %11 : vector<16x128xf32>
    %14 = arith.mulf %12, %12 : vector<16x128xf32>
    %15 = arith.mulf %13, %13 : vector<16x128xf32>
    %16 = arith.addf %14, %15 : vector<16x128xf32>
    %17 = math.sqrt %16 : vector<16x128xf32>
    %c1_i32_6 = arith.constant 1 : i32
    %18 = vector.broadcast %c1_i32_6 : i32 to vector<16x128xi32>
    %19 = arith.cmpi sge, %4, %18 : vector<16x128xi32>
    %20 = arith.andi %19, %9 : vector<16x128xi1>
    %cst = arith.constant 0.000000e+00 : f32
    %21 = vector.broadcast %cst : f32 to vector<16x128xf32>
    %22 = arith.select %20, %17, %21 : vector<16x128xi1>, vector<16x128xf32>
    %cst_7 = arith.constant dense<0.000000e+00> : vector<128xf32>
    %23 = vector.multi_reduction <add>, %22, %cst_7 [0] : vector<16x128xf32> to vector<128xf32>
    %24 = vector.shape_cast %23 : vector<128xf32> to vector<1x128xf32>
    %c0_i32 = arith.constant 0 : i32
    %25 = arith.cmpi eq, %arg1, %c0_i32 : i32
    %26 = arith.extui %25 : i1 to i32
    %c0_i32_8 = arith.constant 0 : i32
    %27 = arith.cmpi ne, %26, %c0_i32_8 : i32
    scf.if %27 {
      %cst_29 = arith.constant 0.000000e+00 : f32
      %53 = vector.broadcast %cst_29 : f32 to vector<1x128xf32>
      %c0_30 = arith.constant 0 : index
      %c0_31 = arith.constant 0 : index
      %54 = vector.load %arg4[%c0_30, %c0_31] : memref<1x128xf32, #tpu.memory_space<vmem>>, vector<1x128xf32>
      tpu.vector_store %arg4[%c0_30, %c0_31], %53 {strides = array<i32>} : memref<1x128xf32, #tpu.memory_space<vmem>>, vector<1x128xf32>,
      %55 = vector.extract_strided_slice %1 {offsets = [0, 0], sizes = [1, 128], strides = [1, 1]} : vector<16x128xf32> to vector<1x128xf32>
      %c0_32 = arith.constant 0 : index
      %c0_33 = arith.constant 0 : index
      %56 = vector.load %arg5[%c0_32, %c0_33] : memref<1x128xf32, #tpu.memory_space<vmem>>, vector<1x128xf32>
      tpu.vector_store %arg5[%c0_32, %c0_33], %55 {strides = array<i32>} : memref<1x128xf32, #tpu.memory_space<vmem>>, vector<1x128xf32>,
      %57 = vector.extract_strided_slice %3 {offsets = [0, 0], sizes = [1, 128], strides = [1, 1]} : vector<16x128xf32> to vector<1x128xf32>
      %c0_34 = arith.constant 0 : index
      %c0_35 = arith.constant 0 : index
      %58 = vector.load %arg6[%c0_34, %c0_35] : memref<1x128xf32, #tpu.memory_space<vmem>>, vector<1x128xf32>
      tpu.vector_store %arg6[%c0_34, %c0_35], %57 {strides = array<i32>} : memref<1x128xf32, #tpu.memory_space<vmem>>, vector<1x128xf32>,
    } else {
    }
    %c0_i32_9 = arith.constant 0 : i32
    %28 = arith.cmpi sgt, %arg1, %c0_i32_9 : i32
    %29 = arith.extui %28 : i1 to i32
    %c0_i32_10 = arith.constant 0 : i32
    %30 = arith.cmpi ne, %29, %c0_i32_10 : i32
    scf.if %30 {
      %53 = vector.extract_strided_slice %1 {offsets = [0, 0], sizes = [1, 128], strides = [1, 1]} : vector<16x128xf32> to vector<1x128xf32>
      %c0_29 = arith.constant 0 : index
      %c0_30 = arith.constant 0 : index
      %54 = vector.load %arg7[%c0_29, %c0_30] : memref<1x128xf32, #tpu.memory_space<vmem>>, vector<1x128xf32>
      %55 = arith.subf %53, %54 : vector<1x128xf32>
      %56 = vector.extract_strided_slice %3 {offsets = [0, 0], sizes = [1, 128], strides = [1, 1]} : vector<16x128xf32> to vector<1x128xf32>
      %c0_31 = arith.constant 0 : index
      %c0_32 = arith.constant 0 : index
      %57 = vector.load %arg8[%c0_31, %c0_32] : memref<1x128xf32, #tpu.memory_space<vmem>>, vector<1x128xf32>
      %58 = arith.subf %56, %57 : vector<1x128xf32>
      %c0_33 = arith.constant 0 : index
      %c0_34 = arith.constant 0 : index
      %59 = vector.load %arg4[%c0_33, %c0_34] : memref<1x128xf32, #tpu.memory_space<vmem>>, vector<1x128xf32>
      %60 = arith.mulf %55, %55 : vector<1x128xf32>
      %61 = arith.mulf %58, %58 : vector<1x128xf32>
      %62 = arith.addf %60, %61 : vector<1x128xf32>
      %63 = math.sqrt %62 : vector<1x128xf32>
      %64 = arith.addf %59, %63 : vector<1x128xf32>
      %c0_35 = arith.constant 0 : index
      %c0_36 = arith.constant 0 : index
      %65 = vector.load %arg4[%c0_35, %c0_36] : memref<1x128xf32, #tpu.memory_space<vmem>>, vector<1x128xf32>
      tpu.vector_store %arg4[%c0_35, %c0_36], %64 {strides = array<i32>} : memref<1x128xf32, #tpu.memory_space<vmem>>, vector<1x128xf32>,
    } else {
    }
    %c0_11 = arith.constant 0 : index
    %c0_12 = arith.constant 0 : index
    %31 = vector.load %arg4[%c0_11, %c0_12] : memref<1x128xf32, #tpu.memory_space<vmem>>, vector<1x128xf32>
    %32 = arith.addf %31, %24 : vector<1x128xf32>
    %c0_13 = arith.constant 0 : index
    %c0_14 = arith.constant 0 : index
    %33 = vector.load %arg4[%c0_13, %c0_14] : memref<1x128xf32, #tpu.memory_space<vmem>>, vector<1x128xf32>
    tpu.vector_store %arg4[%c0_13, %c0_14], %32 {strides = array<i32>} : memref<1x128xf32, #tpu.memory_space<vmem>>, vector<1x128xf32>,
    %c16_i32_15 = arith.constant 16 : i32
    %34 = arith.muli %arg1, %c16_i32_15 : i32
    %c16_i32_16 = arith.constant 16 : i32
    %35 = arith.subi %c16_i32_16, %34 : i32
    %c16_i32_17 = arith.constant 16 : i32
    %36 = arith.minsi %35, %c16_i32_17 : i32
    %c1_i32_18 = arith.constant 1 : i32
    %37 = arith.subi %36, %c1_i32_18 : i32
    %38 = vector.broadcast %37 : i32 to vector<16x128xi32>
    %39 = arith.cmpi eq, %4, %38 : vector<16x128xi32>
    %cst_19 = arith.constant 0.000000e+00 : f32
    %40 = vector.broadcast %cst_19 : f32 to vector<16x128xf32>
    %41 = arith.select %39, %1, %40 : vector<16x128xi1>, vector<16x128xf32>
    %cst_20 = arith.constant dense<0.000000e+00> : vector<128xf32>
    %42 = vector.multi_reduction <add>, %41, %cst_20 [0] : vector<16x128xf32> to vector<128xf32>
    %43 = vector.shape_cast %42 : vector<128xf32> to vector<1x128xf32>
    %c0_21 = arith.constant 0 : index
    %c0_22 = arith.constant 0 : index
    %44 = vector.load %arg7[%c0_21, %c0_22] : memref<1x128xf32, #tpu.memory_space<vmem>>, vector<1x128xf32>
    tpu.vector_store %arg7[%c0_21, %c0_22], %43 {strides = array<i32>} : memref<1x128xf32, #tpu.memory_space<vmem>>, vector<1x128xf32>,
    %cst_23 = arith.constant 0.000000e+00 : f32
    %45 = vector.broadcast %cst_23 : f32 to vector<16x128xf32>
    %46 = arith.select %39, %3, %45 : vector<16x128xi1>, vector<16x128xf32>
    %cst_24 = arith.constant dense<0.000000e+00> : vector<128xf32>
    %47 = vector.multi_reduction <add>, %46, %cst_24 [0] : vector<16x128xf32> to vector<128xf32>
    %48 = vector.shape_cast %47 : vector<128xf32> to vector<1x128xf32>
    %c0_25 = arith.constant 0 : index
    %c0_26 = arith.constant 0 : index
    %49 = vector.load %arg8[%c0_25, %c0_26] : memref<1x128xf32, #tpu.memory_space<vmem>>, vector<1x128xf32>
    tpu.vector_store %arg8[%c0_25, %c0_26], %48 {strides = array<i32>} : memref<1x128xf32, #tpu.memory_space<vmem>>, vector<1x128xf32>,
    %c0_i32_27 = arith.constant 0 : i32
    %50 = arith.cmpi eq, %arg1, %c0_i32_27 : i32
    %51 = arith.extui %50 : i1 to i32
    %c0_i32_28 = arith.constant 0 : i32
    %52 = arith.cmpi ne, %51, %c0_i32_28 : i32
    scf.if %52 {
      %c0_29 = arith.constant 0 : index
      %c0_30 = arith.constant 0 : index
      %53 = vector.load %arg5[%c0_29, %c0_30] : memref<1x128xf32, #tpu.memory_space<vmem>>, vector<1x128xf32>
      %c0_31 = arith.constant 0 : index
      %c0_32 = arith.constant 0 : index
      %54 = vector.load %arg7[%c0_31, %c0_32] : memref<1x128xf32, #tpu.memory_space<vmem>>, vector<1x128xf32>
      %55 = arith.subf %53, %54 : vector<1x128xf32>
      %c0_33 = arith.constant 0 : index
      %c0_34 = arith.constant 0 : index
      %56 = vector.load %arg6[%c0_33, %c0_34] : memref<1x128xf32, #tpu.memory_space<vmem>>, vector<1x128xf32>
      %c0_35 = arith.constant 0 : index
      %c0_36 = arith.constant 0 : index
      %57 = vector.load %arg8[%c0_35, %c0_36] : memref<1x128xf32, #tpu.memory_space<vmem>>, vector<1x128xf32>
      %58 = arith.subf %56, %57 : vector<1x128xf32>
      %c0_37 = arith.constant 0 : index
      %c0_38 = arith.constant 0 : index
      %59 = vector.load %arg4[%c0_37, %c0_38] : memref<1x128xf32, #tpu.memory_space<vmem>>, vector<1x128xf32>
      %60 = arith.mulf %55, %55 : vector<1x128xf32>
      %61 = arith.mulf %58, %58 : vector<1x128xf32>
      %62 = arith.addf %60, %61 : vector<1x128xf32>
      %63 = math.sqrt %62 : vector<1x128xf32>
      %64 = arith.addf %59, %63 : vector<1x128xf32>
      %c0_39 = arith.constant 0 : index
      %c0_40 = arith.constant 0 : index
      %65 = vector.load %arg3[%c0_39, %c0_40] : memref<1x128xf32, #tpu.memory_space<vmem>>, vector<1x128xf32>
      tpu.vector_store %arg3[%c0_39, %c0_40], %64 {strides = array<i32>} : memref<1x128xf32, #tpu.memory_space<vmem>>, vector<1x128xf32>,
    } else {
    }
    return
  }
  func.func @transform_0(%arg0: i32, %arg1: i32) -> (i32, i32, i32) {
    %c0_i32 = arith.constant 0 : i32
    %c0_i32_0 = arith.constant 0 : i32
    return %c0_i32, %arg1, %arg0 : i32, i32, i32
  }
  func.func @transform_1(%arg0: i32, %arg1: i32) -> (i32, i32) {
    %c0_i32 = arith.constant 0 : i32
    %c0_i32_0 = arith.constant 0 : i32
    return %c0_i32, %arg0 : i32, i32
  }
}

</mosaic_0001>

<bundles_post_ra>
// kernel: solver_forward.2
= control target key start
LH: loop header
LB: loop body
LE: loop exit
PB: predicated region body
PF: predicated region fallthrough
CT: control target
= control target key end

     0   :  { %s860_s0 = inlined_call_operand.vmem [shape: f32[2,16,256], index: 0, kind: input, shape index: {}]   ;;  %s861_s1 = inlined_call_operand.<no memory space> [shape: f32[], index: 1, kind: input, shape index: {}]   ;;  %s862_s2 = inlined_call_operand.vmem [shape: pred[16,256], index: 2, kind: input, shape index: {}]   ;;  %s863_s3 = inlined_call_operand.hbm [shape: f32[1,256], index: 3, kind: output, shape index: {}]  }
   0x1   :  { %v725_v0 = vstv %s861_s1 }
   0x2   :  { %9 = vsyncpa [#allocation8], 0 }
   0x3   :  { %11 = vsyncpa [#allocation8 + $0x1], 0  ;;  %s727_s14 = smov 0   ;;  %s729_s15 = smov 0  }
   0x4   :  { %s731_s16 = smov 0   ;;  %s733_s17 = smov 0  }
   0x5   :  { %s735_s18 = smov 0   ;;  %s737_s19 = smov 0  }
   0x6 LB: > { %s540_s1 = sadd.s32 4294967295, %s698_s19   ;;  %s541_s20 = sadd.s32 4294967294, %s698_s19   ;;  %s698_s19 = sphi %s737_s19, %s17_s19   ;;  %s694_s18 = sphi %s735_s18, %s870_s18   ;;  %s690_s17 = sphi %s733_s17, %s869_s17   ;;  %s686_s16 = sphi %s731_s16, %s868_s16   ;;  %s682_s15 = sphi %s729_s15, %s867_s15   ;;  %s678_s14 = sphi %s727_s14, %s866_s14  }
   0x7   : > { %s29_s21 = sadd.s32 1, %s694_s18  ;;  %s100_s22 = sadd.s32 1, %s686_s16 }
   0x8   : > { %p31_p0 = scmp.ge.s32.totalorder %s29_s21, 2  ;;  %p110_p1 = scmp.ne.s32.totalorder %s686_s16, %s682_s15 }
   0x9   : > { %p111_p2 = scmp.eq.s32.totalorder %s540_s1, 1  ;;  %p116_p3 = scmp.ne.s32.totalorder %s682_s15, %s678_s14 }
   0xa   : > { %s872_s21 = smov (%p31_p0, %s29_s21), 0  ;;  %p117_p5 = scmp.eq.s32.totalorder %s541_s20, 1 }
   0xb   : > { %p767_p4 = por %p111_p2, %p110_p1  ;;  %s97_s24 = ssub.s32 %s694_s18, %s872_s21 }
   0xc   : > { %p546_p6 = scmp.ge.s32.totalorder %s698_s19, 1  ;;  %p98_p7 = scmp.eq.s32.totalorder %s97_s24, 0 }
   0xd   : > { %p774_p8 = por %p117_p5, %p116_p3  ;;  %p167_p9 = scmp.lt.s32.totalorder %s698_s19, 3 }
   0xe   : > { %s780_s26 = scalar_select %p98_p7, %s686_s16, %s100_s22  }
   0xf   : > { %p168_p10 = pnand %p546_p6, %p167_p9 }
  0x10   : > { %p207_p11 = scmp.lt.s32.totalorder (!%p168_p10), %s690_s17, 1  ;;  %v296_v1 = vlaneseq (!%p168_p10)  ;;  %s548_s27 = sshll.u32 (!%p168_p10), %s690_s17, 7  ;;  %v700_v2 = vmov (!%p168_p10), 0.0  }
  0x11   : > { %171 = sbr.rel (%p168_p10) target bundleno = 96 (0x60), region = 28  ;;  %355 = vst [vmem:[#allocation2] sm:$0x1] (!%p168_p10), %v700_v2  ;;  %s230_s29 = sshrl.u32 (!%p168_p10), %s548_s27, 7 }
  0x12   : > { %v785_v3 = vshrl.u32 (!%p168_p10), %v296_v1, 7  ;;  %s549_s4 = sshll.u32 (!%p168_p10), %s230_s29, 1  ;;  %s202_s11 = sand.u32 (!%p168_p10), 1, %s682_s15  }
  0x13   : > { %s238_s10 = scalar_lea.vmem (!%p168_p10), %s862_s2, %s549_s4  ;;  %s555_s12 = sshll.u32 (!%p168_p10), %s690_s17, 4 }
  0x14   : > { %v298_v4 = vadd.s32 (!%p168_p10), 8, %v785_v3  ;;  %v239_v6 = vld [vmem:[%s238_s10] ss:$4 sps:$2 sm:$0xf] (!%p168_p10)   ;;  %vm307_vm2 = vcmp.lt.s32.totalorder (!%p168_p10), %v785_v3, 1  ;;  %vm338_vm8 = vcmp.ge.s32.totalorder (!%p168_p10), %v785_v3, 1  ;;  %s813_s24 = scalar_lea.hbm (!%p168_p10), %s863_s3, %s555_s12 }
  0x15   : > { %v240_v7 = vunpack.c.0.s8 (!%p168_p10), %v239_v6  ;;  %v259_v9 = vunpack.c.1.s8 (!%p168_p10), %v239_v6  ;;  %s203_s13 = scalar_lea.vmem (!%p168_p10), [#allocation7], %s202_s11  ;;  %s432_s27 = scalar_lea.sflag (!%p168_p10), [#allocation8], %s202_s11 }
  0x16   : > { %vm388_vm3 = vcmp.eq.s32.totalorder (!%p168_p10), %v298_v4, 15  ;;  %s444_s1 = sshll.u32 (!%p168_p10), %s203_s13, 4  ;;  %s815_s1 = int_to_ptr.vmem [resolvable:$true] %s444_s1 }
  0x17   : > { %vm246_vm0 = vcmp.ne.s32.totalorder (!%p168_p10), %v240_v7, 0  ;;  %vm265_vm1 = vcmp.ne.s32.totalorder (!%p168_p10), %v259_v9, 0 }
  0x18   : > { %s208_s28 = scalar_select %p207_p11, %s690_s17, 1 }
  0x19   : > { %s701_s17 = smov [#allocation7]  }
  0x1a   : > { %s547_s30 = sshll.u32 %s208_s28, 3  ;;  %s620_s28 = scalar_lea.vmem %s815_s1, 16 }
  0x1b   : > { %s212_s7 = scalar_lea.vmem %s860_s0, %s547_s30  ;;  %p621_p12 = scmp.ne.s32.totalorder %s815_s1, %s620_s28 }
  0x1c   : > { %v234_v5 = vld [vmem:[%s212_s7] sm:$0xff]  ;;  %v550_v8 = vld [vmem:[%s212_s7 + $0x10] sm:$0xff]  ;;  %s624_s29 = sshll.u32 %s701_s17, 4  ;;  %s625_s29 = int_to_ptr.vmem [resolvable:$false] %s624_s29 }
  0x1d   : > { %v553_v10 = vld [vmem:[%s212_s7 + $0x20] sm:$0xff]  ;;  %v554_v11 = vld [vmem:[%s212_s7 + $0x30] sm:$0xff]  ;;  %v247_v12 = vsel %vm246_vm0, %v234_v5, %v725_v0  ;;  %v266_v13 = vsel %vm265_vm1, %v550_v8, %v725_v0  ;;  %p622_p13 = pnand %p621_p12, %p767_p4  ;;  %s626_s30 = scalar_lea.vmem %s625_s29, 32 }
  0x1e   : > { %v276_v14 = vsel %vm246_vm0, %v553_v10, %v725_v0  ;;  %v286_v15 = vsel %vm265_vm1, %v554_v11, %v725_v0  ;;  %v305_v16 = vrot.slane %v247_v12, 7  ;;  %v306_v17 = vrot.slane %v266_v13, 7  ;;  %356 = vst [vmem:[#allocation3] sm:$0x1] %v247_v12  ;;  %v379_v11 = vld [vmem:[#allocation2] sm:$0x1]  ;;  %p627_p1 = scmp.lt.s32.totalorder %s815_s1, %s625_s29  ;;  %p628_p2 = scmp.lt.s32.totalorder %s626_s30, %s620_s28 }
  0x1f   : > { %v310_v18 = vrot.slane %v276_v14, 7  ;;  %v311_v19 = vrot.slane %v286_v15, 7  ;;  %357 = vst [vmem:[#allocation4] sm:$0x1] %v276_v14  ;;  %v390_v20 = vsel %vm388_vm3, %v266_v13, 0.0  ;;  %v400_v21 = vsel %vm388_vm3, %v286_v15, 0.0  ;;  %p623_p0 = pneg %p622_p13 }
  0x20   : > { %v308_v22 = vsel %vm307_vm2, %v305_v16, %v306_v17  ;;  %v309_v23 = vsel %vm307_vm2, %v306_v17, %v305_v16  ;;  %v392_v30 = vrot.slane %v390_v20, 4  ;;  %v402_v31 = vrot.slane %v400_v21, 4  ;;  %p629_p3 = por %p628_p2, %p627_p1 }
  0x21   : > { %v312_v24 = vsel %vm307_vm2, %v310_v18, %v311_v19  ;;  %v313_v25 = vsel %vm307_vm2, %v311_v19, %v310_v18  ;;  %v314_v26 = vsub.f32 %v247_v12, %v309_v23  ;;  %v315_v27 = vsub.f32 %v266_v13, %v308_v22 }
  0x22   : > { %v316_v28 = vsub.f32 %v276_v14, %v313_v25  ;;  %v317_v29 = vsub.f32 %v286_v15, %v312_v24  ;;  %v393_v36 = vadd.f32 %v392_v30, %v390_v20  ;;  %v403_v37 = vadd.f32 %v402_v31, %v400_v21  ;;  %p630_p5 = pnand %p629_p3, %p623_p0 }
  0x23   : > { %v318_v32 = vmul.f32 %v314_v26, %v314_v26  ;;  %v319_v33 = vmul.f32 %v315_v27, %v315_v27 }
  0x24   : > { %v320_v34 = vmul.f32 %v316_v28, %v316_v28  ;;  %v321_v35 = vmul.f32 %v317_v29, %v317_v29  ;;  %v394_v40 = vrot.slane %v393_v36, 2  ;;  %v404_v41 = vrot.slane %v403_v37, 2 }
  0x25   : > { %v412_v55 = vld [vmem:[#allocation3] sm:$0x1] }
  0x26   : > { %v322_v38 = vadd.f32 %v320_v34, %v318_v32  ;;  %v323_v39 = vadd.f32 %v321_v35, %v319_v33  ;;  %v395_v42 = vadd.f32 %v394_v40, %v393_v36  ;;  %v405_v43 = vadd.f32 %v404_v41, %v403_v37  ;;  %v415_v56 = vld [vmem:[#allocation4] sm:$0x1] }
  0x28   : > { %614 = vrsqrt.f32 %v322_v38  ;;  %v396_v44 = vrot.slane %v395_v42, 1  ;;  %v406_v45 = vrot.slane %v405_v43, 1  ;;  %vm326_vm4 = vcmp.eq.f32.partialorder %v322_v38, inf }
  0x29   : > { %616 = vrsqrt.f32 %v323_v39  ;;  %v329_v49 = vand.u32 2147483648, %v322_v38  ;;  %vm328_vm5 = vcmp.eq.f32.partialorder %v322_v38, 0.0  ;;  %vm333_vm6 = vcmp.eq.f32.partialorder %v323_v39, inf }
  0x2a   : > { %v397_v46 = vadd.f32 %v396_v44, %v395_v42  ;;  %v407_v47 = vadd.f32 %v406_v45, %v405_v43  ;;  %v336_v52 = vand.u32 2147483648, %v323_v39  ;;  %vm335_vm7 = vcmp.eq.f32.partialorder %v323_v39, 0.0 }
  0x2c   : > { %398 = vst [vmem:[#allocation5] sm:$0x1] %v397_v46  ;;  %408 = vst [vmem:[#allocation6] sm:$0x1] %v407_v47 }
  0x32   : > { %v615_v48 = vpop.eup %614 }
  0x33   : > { %v617_v50 = vpop.eup %616  ;;  %v325_v51 = vmul.f32 %v615_v48, %v322_v38  ;;  %v413_v61 = vld [vmem:[#allocation5] sm:$0x1]  ;;  %v416_v62 = vld [vmem:[#allocation6] sm:$0x1] }
  0x34   : > { %v332_v53 = vmul.f32 %v617_v50, %v323_v39  ;;  %v414_v1 = vsub.f32 %v412_v55, %v413_v61  ;;  %v417_v2 = vsub.f32 %v415_v56, %v416_v62 }
  0x35   : > { %v327_v54 = vsel %vm326_vm4, %v322_v38, %v325_v51 }
  0x36   : > { %v330_v57 = vsel %vm328_vm5, %v329_v49, %v327_v54  ;;  %v334_v58 = vsel %vm333_vm6, %v323_v39, %v332_v53  ;;  %v419_v5 = vmul.f32 %v414_v1, %v414_v1  ;;  %v420_v6 = vmul.f32 %v417_v2, %v417_v2 }
  0x37   : > { %v337_v59 = vsel %vm335_vm7, %v336_v52, %v334_v58  ;;  %v342_v60 = vsel %vm338_vm8, %v330_v57, 0.0 }
  0x38   : > { %v344_v63 = vadd.f32 %v342_v60, %v337_v59  ;;  %v421_v8 = vadd.f32 %v420_v6, %v419_v5 }
  0x3a   : > { %v345_v4 = vrot.slane %v344_v63, 4  ;;  %618 = vrsqrt.f32 %v421_v8  ;;  %vm424_vm9 = vcmp.eq.f32.partialorder %v421_v8, inf  ;;  %v427_v16 = vand.u32 2147483648, %v421_v8 }
  0x3b   : > { %vm426_vm10 = vcmp.eq.f32.partialorder %v421_v8, 0.0 }
  0x3c   : > { %v346_v7 = vadd.f32 %v345_v4, %v344_v63 }
  0x3e   : > { %v347_v9 = vrot.slane %v346_v7, 2 }
  0x40   : > { %v348_v3 = vadd.f32 %v347_v9, %v346_v7 }
  0x42   : > { %v349_v10 = vrot.slane %v348_v3, 1 }
  0x44   : > { %v350_v12 = vadd.f32 %v349_v10, %v348_v3  ;;  %v619_v14 = vpop.eup %618 }
  0x45   : > { %v423_v15 = vmul.f32 %v619_v14, %v421_v8 }
  0x46   : > { %v380_v13 = vadd.f32 %v379_v11, %v350_v12 }
  0x47   : > { %v425_v17 = vsel %vm424_vm9, %v421_v8, %v423_v15 }
  0x48   : > { %381 = vst [vmem:[#allocation2] sm:$0x1] %v380_v13  ;;  %v428_v18 = vsel %vm426_vm10, %v427_v16, %v425_v17 }
  0x4f   : > { %v418_v19 = vld [vmem:[#allocation2] sm:$0x1] }
  0x50   : > { %v429_v20 = vadd.f32 %v428_v18, %v418_v19 }
  0x52   : > { %430 = vst [vmem:[%s203_s13] sm:$0x1] %v429_v20 }
  0x53   : > { %633 = shalt.err (!%p630_p5)
}
  0x54   : > { %s634_s4 = scalar_lea.hbm %s813_s24, 16  ;;  %s638_s7 = scalar_lea.hbm %s863_s3, 32 }
  0x55   : > { %p635_p6 = scmp.ne.s32.totalorder %s813_s24, %s634_s4  ;;  %p639_p10 = scmp.lt.u32.totalorder %s813_s24, %s863_s3 }
  0x56   : > { %p640_p11 = scmp.lt.u32.totalorder %s638_s7, %s634_s4  ;;  %p642_p13 = scmp.lt.u32.totalorder %s634_s4, %s813_s24 }
  0x57   : > { %p636_p7 = pnand %p635_p6, %p767_p4 }
  0x58   : > { %p641_p12 = por %p640_p11, %p639_p10 }
  0x59   : > { %p637_p9 = pneg %p636_p7 }
  0x5a   : > { %p643_p0 = por %p642_p13, %p641_p12 }
  0x5c   : > { %p644_p1 = pnand %p643_p0, %p637_p9 }
  0x5e   : > { %647 = shalt.err (!%p644_p1)
}
  0x5f   : > { %558 = dma.vmem_to_hbm [thread:$0]  (%p767_p4), %s815_s1, 16, %s813_s24, %s432_s27  }
  0x60 PF: > { %p564_p2 = scmp.ge.s32.totalorder %s698_s19, 2  ;;  %s456_s10 = sand.u32 1, %s678_s14  }
  0x61   : > { %s457_s11 = scalar_lea.sflag [#allocation8], %s456_s10 }
  0x62   : > { %p561_p3 = pnand %p564_p2, %p774_p8 }
  0x64   : > { %673 = dma.done.wait (!%p561_p3), %s457_s11, 16  }
  0x65   : > { %675 = vsyncadd (!%p561_p3), %s457_s11, 4294967280  ;;  %s17_s19 = sadd.s32 1, %s698_s19   ;;  %s866_s14 = smov %s682_s15 }
  0x66   : > { %p14_p5 = scmp.ge.s32.totalorder %s17_s19, 4   ;;  %s867_s15 = smov %s686_s16 }
  0x67   : > { %s868_s16 = smov %s780_s26  ;;  %s869_s17 = smov %s694_s18 }
  0x68   : > { %s870_s18 = smov %s872_s21  ;;  %16 = sbr.rel (!%p14_p5) target bundleno = 6 (0x6), region = 87 }
  0x6f   :  { %461 = vsyncpa [#allocation8], 1 }
  0x70   :  { %463 = vsyncpa [#allocation8 + $0x1], 1 }

</bundles_post_ra>
